<compile_context>
chip_gen: v7x
topology: tpu7x:2x2x1
jax: 0.10.0
libtpu: 0.0.40
codegen_flags: <defaults>
</compile_context>

<pallas_src>
import numpy as np
import jax
import jax.numpy as jnp
from jax.experimental import pallas as pl
from jax.experimental.pallas import tpu as pltpu

D = 32            # input_dim
H1 = 4 * D
H2 = 2 * D
ALPHA = 0.6


def _round_up(x, m):
    return (x + m - 1) // m * m


# ----------------------------- Pallas kernel --------------------------------
def _discriminator_score_kernel(xi_ref, xut_ref,
                                w1_ref, b1_ref, w2_ref, b2_ref, w3_ref, b3_ref,
                                w1t_ref, b1t_ref, w2t_ref, b2t_ref, w3t_ref, b3t_ref,
                                out_ref):
    # ---- intention-side judge: rows (TM, D); bf16 MXU operands, f32 math ----
    h = jnp.dot(xi_ref[...], w1_ref[...], preferred_element_type=jnp.float32) + b1_ref[...]
    h = jnp.maximum(h, 0.0)
    h = jnp.dot(h.astype(jnp.bfloat16), w2_ref[...],
                preferred_element_type=jnp.float32) + b2_ref[...]
    h = jnp.maximum(h, 0.0)
    h = jnp.dot(h.astype(jnp.bfloat16), w3_ref[...],
                preferred_element_type=jnp.float32) + b3_ref[...]
    ji = jnp.maximum(h, 0.0)                                   # (TM, D) f32

    # ---- user-side judge in transposed (column) layout: (D, NU_pad) ----
    g = jnp.dot(w1t_ref[...], xut_ref[...], preferred_element_type=jnp.float32) + b1t_ref[...]
    g = jnp.maximum(g, 0.0)
    g = jnp.dot(w2t_ref[...], g.astype(jnp.bfloat16),
                preferred_element_type=jnp.float32) + b2t_ref[...]
    g = jnp.maximum(g, 0.0)
    g = jnp.dot(w3t_ref[...], g.astype(jnp.bfloat16),
                preferred_element_type=jnp.float32) + b3t_ref[...]
    jut = jnp.maximum(g, 0.0)                                  # (D, NU_pad) f32

    # pairwise scores: plain (TM, D) @ (D, NU_pad) -> lane-dense output block
    m = jnp.dot(ji.astype(jnp.bfloat16), jut.astype(jnp.bfloat16),
                preferred_element_type=jnp.float32)            # (TM, NU_pad)
    # numerically stable softplus (f32)
    out_ref[...] = jnp.maximum(m, 0.0) + jnp.log1p(jnp.exp(-jnp.abs(m)))


def pair_scores(xi, xu, params):
    """scores[i, u] = softplus(max(judge(xi[i:i+1]) @ judge(xu[u:u+1]).T))."""
    w1, b1, w2, b2, w3, b3 = params
    ni, d = xi.shape
    nu = xu.shape[0]

    nu_pad = _round_up(nu, 128)                 # lane-dense output
    tm = min(256, _round_up(ni, 8))             # sublane-aligned row tile
    ni_pad = _round_up(ni, tm)

    # padded bf16 operands (zero-padded rows/cols are sliced away afterwards)
    xi_p = jnp.pad(xi.astype(jnp.bfloat16), ((0, ni_pad - ni), (0, 0)))
    xut_p = jnp.pad(xu.T.astype(jnp.bfloat16), ((0, 0), (0, nu_pad - nu)))

    w1b, w2b, w3b = (w.astype(jnp.bfloat16) for w in (w1, w2, w3))
    w1t, w2t, w3t = (w.T.astype(jnp.bfloat16) for w in (w1, w2, w3))
    b1t, b2t, b3t = (b.T for b in (b1, b2, b3))                 # (out, 1) f32

    args = (xi_p, xut_p,
            w1b, b1, w2b, b2, w3b, b3,
            w1t, b1t, w2t, b2t, w3t, b3t)

    # xi is blocked over the grid; weights / user block are grid-invariant
    in_specs = [pl.BlockSpec((tm, d), lambda i: (i, 0))]
    in_specs += [pl.BlockSpec(a.shape, lambda i: (0, 0)) for a in args[1:]]

    out = pl.pallas_call(
        _discriminator_score_kernel,
        grid=(ni_pad // tm,),
        in_specs=in_specs,
        out_specs=pl.BlockSpec((tm, nu_pad), lambda i: (i, 0)),
        out_shape=jax.ShapeDtypeStruct((ni_pad, nu_pad), jnp.float32),
        compiler_params=pltpu.CompilerParams(
            dimension_semantics=("parallel",)),
    )(*args)
    return out[:ni, :nu]


# ----------------------------- parameter init -------------------------------
def init_linear(key, fan_in, fan_out):
    kw, kb = jax.random.split(key)
    bound = 1.0 / np.sqrt(fan_in)
    w = jax.random.uniform(kw, (fan_in, fan_out), jnp.float32, -bound, bound)
    b = jax.random.uniform(kb, (1, fan_out), jnp.float32, -bound, bound)
    return w, b


# ----------------------------- data containers ------------------------------
class Node:
    def __init__(self, nid):
        self.id = nid


class Intention:
    def __init__(self, aggr_feature, node_ids):
        self.aggr_feature = aggr_feature          # (1, D)
        self.node_list = [Node(i) for i in node_ids]


class User:
    def __init__(self, feature, item_list, intention_list):
        self.feature = feature                     # (1, D)
        self.item_list = item_list                 # set of node ids
        self.intention_list = intention_list       # user's own intentions


# ----------------------------- forward (glue) -------------------------------
def discriminator_forward(users_list, intention_list, params, alpha=ALPHA):
    xu = jnp.concatenate([u.feature for u in users_list], axis=0)               # (NU, D)
    xi_global = jnp.concatenate([it.aggr_feature for it in intention_list], 0)  # (NIg, D)
    own = [it for u in users_list for it in u.intention_list]
    own_user = jnp.asarray([ui for ui, u in enumerate(users_list)
                            for _ in u.intention_list], jnp.int32)
    xi_own = jnp.concatenate([it.aggr_feature for it in own], axis=0)           # (Nown, D)

    nig, n_own, nu = xi_global.shape[0], xi_own.shape[0], xu.shape[0]

    # single fused Pallas call: one launch, one weight DMA, judge(xu) once
    xi_all = jnp.concatenate([xi_global, xi_own], axis=0)                       # (NIg+Nown, D)
    scores = pair_scores(xi_all, xu, params)                                    # Pallas hot path
    s_global = scores[:nig]                                                     # (NIg, NU)
    s_own = scores[nig:]                                                        # (Nown, NU)

    # ---- local loss: matches reference — `score` is never updated, stays 0 ----
    # TODO(synk): reference's per-user top-20 sort + print('temp_score:...') is
    # dead compute (never affects the returned loss); omitted to avoid a
    # device->host sync on the hot path.
    local_loss = jnp.float32(0.0)

    # ---- global loss ----
    pos_mean = jnp.mean(s_global, axis=0)                                       # (NU,)
    own_scores = s_own[jnp.arange(n_own), own_user]                             # (Nown,)
    own_sum = jax.ops.segment_sum(own_scores, own_user, num_segments=nu)        # (NU,)
    own_cnt = jax.ops.segment_sum(jnp.ones_like(own_scores), own_user,
                                  num_segments=nu)
    neg_mean = own_sum / jnp.maximum(own_cnt, 1.0)                              # (NU,)
    sum_loss = (neg_mean - pos_mean)[:, None]                                   # (NU, 1)
    # BatchNorm1d(1) in training mode: batch stats, gamma=1, beta=0, eps=1e-5
    mu = jnp.mean(sum_loss, axis=0, keepdims=True)
    var = jnp.mean((sum_loss - mu) ** 2, axis=0, keepdims=True)
    bn = (sum_loss - mu) / jnp.sqrt(var + 1e-5)
    global_loss = jnp.sum(bn)

    return local_loss + global_loss


# --------------------------------- main --------------------------------------
if __name__ == "__main__":
    key = jax.random.PRNGKey(0)
    k1, k2, k3, k_uf, k_gi, k_oi = jax.random.split(key, 6)

    # judge = Linear(D, 4D) -> ReLU -> Linear(4D, 2D) -> ReLU -> Linear(2D, D) -> ReLU
    w1, b1 = init_linear(k1, D, H1)
    w2, b2 = init_linear(k2, H1, H2)
    w3, b3 = init_linear(k3, H2, D)
    params = (w1, b1, w2, b2, w3, b3)

    NU = 2            # users
    NIG = 6           # global intentions
    N_OWN_PER_USER = 2

    user_feats = jax.random.normal(k_uf, (NU, 1, D), jnp.float32)
    global_feats = jax.random.normal(k_gi, (NIG, 1, D), jnp.float32)
    own_feats = jax.random.normal(k_oi, (NU * N_OWN_PER_USER, 1, D), jnp.float32)

    # deterministic node ids / item lists
    intention_list = [Intention(global_feats[i], node_ids=list(range(4 * i, 4 * i + 4)))
                      for i in range(NIG)]
    users_list = []
    for u in range(NU):
        own_ints = [Intention(own_feats[u * N_OWN_PER_USER + j],
                              node_ids=list(range(100 + 3 * j, 100 + 3 * j + 3)))
                    for j in range(N_OWN_PER_USER)]
        item_list = set(range(2 * u, 2 * u + 8))
        users_list.append(User(user_feats[u], item_list, own_ints))

    out = discriminator_forward(users_list, intention_list, params)
    out = jax.block_until_ready(out)
    assert np.isfinite(float(out))
    print("KERNEL_OK")
</pallas_src>

<mosaic_0001>
module attributes {stable_mosaic.version = 11 : i64} {
  func.func @_discriminator_score_kernel(%arg0: i32, %arg1: memref<16x32xbf16, #tpu.memory_space<vmem>>, %arg2: memref<32x128xbf16, #tpu.memory_space<vmem>>, %arg3: memref<32x128xbf16, #tpu.memory_space<vmem>>, %arg4: memref<1x128xf32, #tpu.memory_space<vmem>>, %arg5: memref<128x64xbf16, #tpu.memory_space<vmem>>, %arg6: memref<1x64xf32, #tpu.memory_space<vmem>>, %arg7: memref<64x32xbf16, #tpu.memory_space<vmem>>, %arg8: memref<1x32xf32, #tpu.memory_space<vmem>>, %arg9: memref<128x32xbf16, #tpu.memory_space<vmem>>, %arg10: memref<128x1xf32, #tpu.memory_space<vmem>>, %arg11: memref<64x128xbf16, #tpu.memory_space<vmem>>, %arg12: memref<64x1xf32, #tpu.memory_space<vmem>>, %arg13: memref<32x64xbf16, #tpu.memory_space<vmem>>, %arg14: memref<32x1xf32, #tpu.memory_space<vmem>>, %arg15: memref<16x128xf32, #tpu.memory_space<vmem>>) attributes {dimension_semantics = [#tpu.dimension_semantics<parallel>], iteration_bounds = array<i64: 1>, scalar_prefetch = 0 : i64, scratch_operands = 0 : i64, tpu.core_type = #tpu.core_type<tc>, window_params = [{transform_indices = @transform_0, window_bounds = array<i64: 16, 32>}, {pipeline_mode = #tpu.pipeline_mode<synchronous>, transform_indices = @transform_1, window_bounds = array<i64: 32, 128>}, {pipeline_mode = #tpu.pipeline_mode<synchronous>, transform_indices = @transform_2, window_bounds = array<i64: 32, 128>}, {pipeline_mode = #tpu.pipeline_mode<synchronous>, transform_indices = @transform_3, window_bounds = array<i64: 1, 128>}, {pipeline_mode = #tpu.pipeline_mode<synchronous>, transform_indices = @transform_4, window_bounds = array<i64: 128, 64>}, {pipeline_mode = #tpu.pipeline_mode<synchronous>, transform_indices = @transform_5, window_bounds = array<i64: 1, 64>}, {pipeline_mode = #tpu.pipeline_mode<synchronous>, transform_indices = @transform_6, window_bounds = array<i64: 64, 32>}, {pipeline_mode = #tpu.pipeline_mode<synchronous>, transform_indices = @transform_7, window_bounds = array<i64: 1, 32>}, {pipeline_mode = #tpu.pipeline_mode<synchronous>, transform_indices = @transform_8, window_bounds = array<i64: 128, 32>}, {pipeline_mode = #tpu.pipeline_mode<synchronous>, transform_indices = @transform_9, window_bounds = array<i64: 128, 1>}, {pipeline_mode = #tpu.pipeline_mode<synchronous>, transform_indices = @transform_10, window_bounds = array<i64: 64, 128>}, {pipeline_mode = #tpu.pipeline_mode<synchronous>, transform_indices = @transform_11, window_bounds = array<i64: 64, 1>}, {pipeline_mode = #tpu.pipeline_mode<synchronous>, transform_indices = @transform_12, window_bounds = array<i64: 32, 64>}, {pipeline_mode = #tpu.pipeline_mode<synchronous>, transform_indices = @transform_13, window_bounds = array<i64: 32, 1>}, {transform_indices = @transform_14, window_bounds = array<i64: 16, 128>}]} {
    %c0 = arith.constant 0 : index
    %c0_0 = arith.constant 0 : index
    %0 = vector.load %arg1[%c0, %c0_0] : memref<16x32xbf16, #tpu.memory_space<vmem>>, vector<16x32xbf16>
    %c0_1 = arith.constant 0 : index
    %c0_2 = arith.constant 0 : index
    %1 = vector.load %arg3[%c0_1, %c0_2] : memref<32x128xbf16, #tpu.memory_space<vmem>>, vector<32x128xbf16>
    %cst = arith.constant dense<0.000000e+00> : vector<16x128xf32>
    %2 = tpu.matmul %0, %1, %cst {dimension_numbers = #tpu.dot_dimension_numbers<[1], [0], [0], [1], [0, 0, 1, 1], [], []>} : vector<16x32xbf16>, vector<32x128xbf16>, vector<16x128xf32> -> vector<16x128xf32>
    %c0_3 = arith.constant 0 : index
    %c0_4 = arith.constant 0 : index
    %3 = vector.load %arg4[%c0_3, %c0_4] : memref<1x128xf32, #tpu.memory_space<vmem>>, vector<1x128xf32>
    %4 = vector.broadcast %3 : vector<1x128xf32> to vector<16x128xf32>
    %5 = arith.addf %2, %4 : vector<16x128xf32>
    %cst_5 = arith.constant 0.000000e+00 : f32
    %6 = vector.broadcast %cst_5 : f32 to vector<16x128xf32>
    %7 = arith.maximumf %5, %6 : vector<16x128xf32>
    %8 = arith.truncf %7 : vector<16x128xf32> to vector<16x128xbf16>
    %c0_6 = arith.constant 0 : index
    %c0_7 = arith.constant 0 : index
    %9 = vector.load %arg5[%c0_6, %c0_7] : memref<128x64xbf16, #tpu.memory_space<vmem>>, vector<128x64xbf16>
    %cst_8 = arith.constant dense<0.000000e+00> : vector<16x64xf32>
    %10 = tpu.matmul %8, %9, %cst_8 {dimension_numbers = #tpu.dot_dimension_numbers<[1], [0], [0], [1], [0, 0, 1, 1], [], []>} : vector<16x128xbf16>, vector<128x64xbf16>, vector<16x64xf32> -> vector<16x64xf32>
    %c0_9 = arith.constant 0 : index
    %c0_10 = arith.constant 0 : index
    %11 = vector.load %arg6[%c0_9, %c0_10] : memref<1x64xf32, #tpu.memory_space<vmem>>, vector<1x64xf32>
    %12 = vector.broadcast %11 : vector<1x64xf32> to vector<16x64xf32>
    %13 = arith.addf %10, %12 : vector<16x64xf32>
    %cst_11 = arith.constant 0.000000e+00 : f32
    %14 = vector.broadcast %cst_11 : f32 to vector<16x64xf32>
    %15 = arith.maximumf %13, %14 : vector<16x64xf32>
    %16 = arith.truncf %15 : vector<16x64xf32> to vector<16x64xbf16>
    %c0_12 = arith.constant 0 : index
    %c0_13 = arith.constant 0 : index
    %17 = vector.load %arg7[%c0_12, %c0_13] : memref<64x32xbf16, #tpu.memory_space<vmem>>, vector<64x32xbf16>
    %cst_14 = arith.constant dense<0.000000e+00> : vector<16x32xf32>
    %18 = tpu.matmul %16, %17, %cst_14 {dimension_numbers = #tpu.dot_dimension_numbers<[1], [0], [0], [1], [0, 0, 1, 1], [], []>} : vector<16x64xbf16>, vector<64x32xbf16>, vector<16x32xf32> -> vector<16x32xf32>
    %c0_15 = arith.constant 0 : index
    %c0_16 = arith.constant 0 : index
    %19 = vector.load %arg8[%c0_15, %c0_16] : memref<1x32xf32, #tpu.memory_space<vmem>>, vector<1x32xf32>
    %20 = vector.broadcast %19 : vector<1x32xf32> to vector<16x32xf32>
    %21 = arith.addf %18, %20 : vector<16x32xf32>
    %cst_17 = arith.constant 0.000000e+00 : f32
    %22 = vector.broadcast %cst_17 : f32 to vector<16x32xf32>
    %23 = arith.maximumf %21, %22 : vector<16x32xf32>
    %c0_18 = arith.constant 0 : index
    %c0_19 = arith.constant 0 : index
    %24 = vector.load %arg9[%c0_18, %c0_19] : memref<128x32xbf16, #tpu.memory_space<vmem>>, vector<128x32xbf16>
    %c0_20 = arith.constant 0 : index
    %c0_21 = arith.constant 0 : index
    %25 = vector.load %arg2[%c0_20, %c0_21] : memref<32x128xbf16, #tpu.memory_space<vmem>>, vector<32x128xbf16>
    %cst_22 = arith.constant dense<0.000000e+00> : vector<128x128xf32>
    %26 = tpu.matmul %24, %25, %cst_22 {dimension_numbers = #tpu.dot_dimension_numbers<[1], [0], [0], [1], [0, 0, 1, 1], [], []>} : vector<128x32xbf16>, vector<32x128xbf16>, vector<128x128xf32> -> vector<128x128xf32>
    %c0_23 = arith.constant 0 : index
    %c0_24 = arith.constant 0 : index
    %27 = vector.load %arg10[%c0_23, %c0_24] : memref<128x1xf32, #tpu.memory_space<vmem>>, vector<128x1xf32>
    %28 = vector.broadcast %27 : vector<128x1xf32> to vector<128x128xf32>
    %29 = arith.addf %26, %28 : vector<128x128xf32>
    %cst_25 = arith.constant 0.000000e+00 : f32
    %30 = vector.broadcast %cst_25 : f32 to vector<128x128xf32>
    %31 = arith.maximumf %29, %30 : vector<128x128xf32>
    %c0_26 = arith.constant 0 : index
    %c0_27 = arith.constant 0 : index
    %32 = vector.load %arg11[%c0_26, %c0_27] : memref<64x128xbf16, #tpu.memory_space<vmem>>, vector<64x128xbf16>
    %33 = arith.truncf %31 : vector<128x128xf32> to vector<128x128xbf16>
    %cst_28 = arith.constant dense<0.000000e+00> : vector<64x128xf32>
    %34 = tpu.matmul %32, %33, %cst_28 {dimension_numbers = #tpu.dot_dimension_numbers<[1], [0], [0], [1], [0, 0, 1, 1], [], []>} : vector<64x128xbf16>, vector<128x128xbf16>, vector<64x128xf32> -> vector<64x128xf32>
    %c0_29 = arith.constant 0 : index
    %c0_30 = arith.constant 0 : index
    %35 = vector.load %arg12[%c0_29, %c0_30] : memref<64x1xf32, #tpu.memory_space<vmem>>, vector<64x1xf32>
    %36 = vector.broadcast %35 : vector<64x1xf32> to vector<64x128xf32>
    %37 = arith.addf %34, %36 : vector<64x128xf32>
    %cst_31 = arith.constant 0.000000e+00 : f32
    %38 = vector.broadcast %cst_31 : f32 to vector<64x128xf32>
    %39 = arith.maximumf %37, %38 : vector<64x128xf32>
    %c0_32 = arith.constant 0 : index
    %c0_33 = arith.constant 0 : index
    %40 = vector.load %arg13[%c0_32, %c0_33] : memref<32x64xbf16, #tpu.memory_space<vmem>>, vector<32x64xbf16>
    %41 = arith.truncf %39 : vector<64x128xf32> to vector<64x128xbf16>
    %cst_34 = arith.constant dense<0.000000e+00> : vector<32x128xf32>
    %42 = tpu.matmul %40, %41, %cst_34 {dimension_numbers = #tpu.dot_dimension_numbers<[1], [0], [0], [1], [0, 0, 1, 1], [], []>} : vector<32x64xbf16>, vector<64x128xbf16>, vector<32x128xf32> -> vector<32x128xf32>
    %c0_35 = arith.constant 0 : index
    %c0_36 = arith.constant 0 : index
    %43 = vector.load %arg14[%c0_35, %c0_36] : memref<32x1xf32, #tpu.memory_space<vmem>>, vector<32x1xf32>
    %44 = vector.broadcast %43 : vector<32x1xf32> to vector<32x128xf32>
    %45 = arith.addf %42, %44 : vector<32x128xf32>
    %cst_37 = arith.constant 0.000000e+00 : f32
    %46 = vector.broadcast %cst_37 : f32 to vector<32x128xf32>
    %47 = arith.maximumf %45, %46 : vector<32x128xf32>
    %48 = arith.truncf %23 : vector<16x32xf32> to vector<16x32xbf16>
    %49 = arith.truncf %47 : vector<32x128xf32> to vector<32x128xbf16>
    %cst_38 = arith.constant dense<0.000000e+00> : vector<16x128xf32>
    %50 = tpu.matmul %48, %49, %cst_38 {dimension_numbers = #tpu.dot_dimension_numbers<[1], [0], [0], [1], [0, 0, 1, 1], [], []>} : vector<16x32xbf16>, vector<32x128xbf16>, vector<16x128xf32> -> vector<16x128xf32>
    %cst_39 = arith.constant 0.000000e+00 : f32
    %51 = vector.broadcast %cst_39 : f32 to vector<16x128xf32>
    %52 = arith.maximumf %50, %51 : vector<16x128xf32>
    %53 = math.absf %50 : vector<16x128xf32>
    %cst_40 = arith.constant 0.000000e+00 : f32
    %54 = vector.broadcast %cst_40 : f32 to vector<16x128xf32>
    %55 = arith.subf %54, %53 : vector<16x128xf32>
    %56 = math.exp %55 : vector<16x128xf32>
    %57 = math.log1p %56 : vector<16x128xf32>
    %58 = arith.addf %52, %57 : vector<16x128xf32>
    %c0_41 = arith.constant 0 : index
    %c0_42 = arith.constant 0 : index
    %59 = vector.load %arg15[%c0_41, %c0_42] : memref<16x128xf32, #tpu.memory_space<vmem>>, vector<16x128xf32>
    tpu.vector_store %arg15[%c0_41, %c0_42], %58 {strides = array<i32>} : memref<16x128xf32, #tpu.memory_space<vmem>>, vector<16x128xf32>,
    return
  }
  func.func @transform_0(%arg0: i32) -> (i32, i32) {
    %c0_i32 = arith.constant 0 : i32
    %c0_i32_0 = arith.constant 0 : i32
    return %arg0, %c0_i32 : i32, i32
  }
  func.func @transform_1(%arg0: i32) -> (i32, i32) {
    %c0_i32 = arith.constant 0 : i32
    %c0_i32_0 = arith.constant 0 : i32
    %c0_i32_1 = arith.constant 0 : i32
    return %c0_i32, %c0_i32_0 : i32, i32
  }
  func.func @transform_2(%arg0: i32) -> (i32, i32) {
    %c0_i32 = arith.constant 0 : i32
    %c0_i32_0 = arith.constant 0 : i32
    %c0_i32_1 = arith.constant 0 : i32
    return %c0_i32, %c0_i32_0 : i32, i32
  }
  func.func @transform_3(%arg0: i32) -> (i32, i32) {
    %c0_i32 = arith.constant 0 : i32
    %c0_i32_0 = arith.constant 0 : i32
    %c0_i32_1 = arith.constant 0 : i32
    return %c0_i32, %c0_i32_0 : i32, i32
  }
  func.func @transform_4(%arg0: i32) -> (i32, i32) {
    %c0_i32 = arith.constant 0 : i32
    %c0_i32_0 = arith.constant 0 : i32
    %c0_i32_1 = arith.constant 0 : i32
    return %c0_i32, %c0_i32_0 : i32, i32
  }
  func.func @transform_5(%arg0: i32) -> (i32, i32) {
    %c0_i32 = arith.constant 0 : i32
    %c0_i32_0 = arith.constant 0 : i32
    %c0_i32_1 = arith.constant 0 : i32
    return %c0_i32, %c0_i32_0 : i32, i32
  }
  func.func @transform_6(%arg0: i32) -> (i32, i32) {
    %c0_i32 = arith.constant 0 : i32
    %c0_i32_0 = arith.constant 0 : i32
    %c0_i32_1 = arith.constant 0 : i32
    return %c0_i32, %c0_i32_0 : i32, i32
  }
  func.func @transform_7(%arg0: i32) -> (i32, i32) {
    %c0_i32 = arith.constant 0 : i32
    %c0_i32_0 = arith.constant 0 : i32
    %c0_i32_1 = arith.constant 0 : i32
    return %c0_i32, %c0_i32_0 : i32, i32
  }
  func.func @transform_8(%arg0: i32) -> (i32, i32) {
    %c0_i32 = arith.constant 0 : i32
    %c0_i32_0 = arith.constant 0 : i32
    %c0_i32_1 = arith.constant 0 : i32
    return %c0_i32, %c0_i32_0 : i32, i32
  }
  func.func @transform_9(%arg0: i32) -> (i32, i32) {
    %c0_i32 = arith.constant 0 : i32
    %c0_i32_0 = arith.constant 0 : i32
    %c0_i32_1 = arith.constant 0 : i32
    return %c0_i32, %c0_i32_0 : i32, i32
  }
  func.func @transform_10(%arg0: i32) -> (i32, i32) {
    %c0_i32 = arith.constant 0 : i32
    %c0_i32_0 = arith.constant 0 : i32
    %c0_i32_1 = arith.constant 0 : i32
    return %c0_i32, %c0_i32_0 : i32, i32
  }
  func.func @transform_11(%arg0: i32) -> (i32, i32) {
    %c0_i32 = arith.constant 0 : i32
    %c0_i32_0 = arith.constant 0 : i32
    %c0_i32_1 = arith.constant 0 : i32
    return %c0_i32, %c0_i32_0 : i32, i32
  }
  func.func @transform_12(%arg0: i32) -> (i32, i32) {
    %c0_i32 = arith.constant 0 : i32
    %c0_i32_0 = arith.constant 0 : i32
    %c0_i32_1 = arith.constant 0 : i32
    return %c0_i32, %c0_i32_0 : i32, i32
  }
  func.func @transform_13(%arg0: i32) -> (i32, i32) {
    %c0_i32 = arith.constant 0 : i32
    %c0_i32_0 = arith.constant 0 : i32
    %c0_i32_1 = arith.constant 0 : i32
    return %c0_i32, %c0_i32_0 : i32, i32
  }
  func.func @transform_14(%arg0: i32) -> (i32, i32) {
    %c0_i32 = arith.constant 0 : i32
    %c0_i32_0 = arith.constant 0 : i32
    return %arg0, %c0_i32 : i32, i32
  }
}

</mosaic_0001>

<bundles_post_ra>
// kernel: tpu_custom_call.1
= control target key start
LH: loop header
LB: loop body
LE: loop exit
PB: predicated region body
PF: predicated region fallthrough
CT: control target
= control target key end

     0   :  { %v1260_v1 = vmov 0.0   ;;  %vm1261_vm0 = vmmov 0   ;;  %vm79_vm1 = vcmask 261120   ;;  %s1583_s0 = inlined_call_operand.vmem [shape: bf16[16,32], index: 0, kind: input, shape index: {}]   ;;  %s1584_s1 = inlined_call_operand.vmem [shape: bf16[32,128], index: 1, kind: input, shape index: {}]   ;;  %s1585_s2 = inlined_call_operand.vmem [shape: bf16[32,128], index: 2, kind: input, shape index: {}]   ;;  %s1586_s3 = inlined_call_operand.vmem [shape: f32[1,128], index: 3, kind: input, shape index: {}]   ;;  %s1587_s4 = inlined_call_operand.vmem [shape: bf16[128,64], index: 4, kind: input, shape index: {}]   ;;  %s1588_s5 = inlined_call_operand.vmem [shape: f32[1,64], index: 5, kind: input, shape index: {}]   ;;  %s1589_s6 = inlined_call_operand.vmem [shape: bf16[64,32], index: 6, kind: input, shape index: {}]   ;;  %s1590_s7 = inlined_call_operand.vmem [shape: f32[1,32], index: 7, kind: input, shape index: {}]   ;;  %s1591_s8 = inlined_call_operand.vmem [shape: bf16[128,32], index: 8, kind: input, shape index: {}]   ;;  %s1592_s9 = inlined_call_operand.vmem [shape: f32[128,1], index: 9, kind: input, shape index: {}]   ;;  %s1593_s10 = inlined_call_operand.vmem [shape: bf16[64,128], index: 10, kind: input, shape index: {}]   ;;  %s1594_s11 = inlined_call_operand.vmem [shape: f32[64,1], index: 11, kind: input, shape index: {}]   ;;  %s1595_s12 = inlined_call_operand.vmem [shape: bf16[32,64], index: 12, kind: input, shape index: {}]   ;;  %s1596_s13 = inlined_call_operand.vmem [shape: f32[32,1], index: 13, kind: input, shape index: {}]   ;;  %s1597_s14 = inlined_call_operand.hbm [shape: f32[16,128], index: 14, kind: output, shape index: {}]  }
   0x1   :  { %v1197_v0 = vld [vmem:[%s1585_s2] sm:$0xff]   ;;  %1085 = vmatprep.subr.bf16.mxu1 %v1260_v1  ;;  %1113 = vmatprep.subr.bf16.mxu0 %v1260_v1  ;;  %v1198_v2 = vld [vmem:[%s1585_s2 + $0x8] sm:$0xff]   ;;  %v1202_v6 = vld [vmem:[%s1587_s4 + $0x10] sm:$0xff]  }
   0x2   :  { %1086 = vmatpush3.bf16.msra.mxu1 %v1197_v0  ;;  %1089 = vmatprep.mubr.msk.bf16.mxu1 %vm1261_vm0, %v1260_v1  ;;  %v1199_v3 = vld [vmem:[%s1583_s0] sm:$0xff]   ;;  %v1201_v5 = vld [vmem:[%s1587_s4 + $0x8] sm:$0xff]   ;;  %v1203_v7 = vld [vmem:[%s1587_s4 + $0x18] sm:$0xff]  }
   0x3   :  { %1087 = vmatprep.subr.bf16.mxu1 %v1260_v1  ;;  %1121 = vmatprep.mubr.msk.bf16.mxu0 %vm1261_vm0, %v1260_v1  ;;  %v1200_v4 = vld [vmem:[%s1587_s4] sm:$0xff]  }
   0x4   :  { %v1204_v8 = vld [vmem:[%s1587_s4 + $0x20] sm:$0xff]  }
   0x6   :  { %1088 = vmatpush3.bf16.msra.mxu1 %v1198_v2 }
   0x7   :  { %1093 = vmatprep.subr.bf16.mxu1 %v1260_v1 }
   0x9   :  { %1090 = vmatmul.mubr.msk.bf16.vlgmr.msra.gmra.mrb[0].mxu1 %vm79_vm1, %v1199_v3 }
   0xa   :  { %1094 = vmatpush3.bf16.msra.mxu1 %v1200_v4  ;;  %1109 = vmatprep.mubr.msk.bf16.mxu1 %vm1261_vm0, %v1260_v1 }
   0xb   :  { %1095 = vmatprep.subr.bf16.mxu1 %v1260_v1 }
   0xe   :  { %1096 = vmatpush3.bf16.msra.mxu1 %v1201_v5 }
   0xf   :  { %1097 = vmatprep.subr.bf16.mxu1 %v1260_v1 }
  0x12   :  { %1098 = vmatpush3.bf16.msra.mxu1 %v1202_v6 }
  0x13   :  { %1099 = vmatprep.subr.bf16.mxu1 %v1260_v1 }
  0x16   :  { %1100 = vmatpush3.bf16.msra.mxu1 %v1203_v7 }
  0x17   :  { %1101 = vmatprep.subr.bf16.mxu1 %v1260_v1 }
  0x18   :  { %19 = vsyncpa [#allocation3], 0  ;;  %v1205_v9 = vld [vmem:[%s1587_s4 + $0x28] sm:$0xff]   ;;  %v1206_v10 = vld [vmem:[%s1587_s4 + $0x30] sm:$0xff]   ;;  %v1262_v29 = vmov 0   ;;  %vm281_vm2 = vcmask 523264  }
  0x19   :  { %v1207_v11 = vld [vmem:[%s1587_s4 + $0x38] sm:$0xff]   ;;  %v1208_v12 = vld [vmem:[%s1589_s6] sm:$0xff]   ;;  %v1209_v13 = vld [vmem:[%s1589_s6 + $0x8] sm:$0xff]   ;;  %1195 = vset.pattern.permute.xlu0 %v1262_v29  ;;  %1196 = vset.pattern.permute.xlu1 %v1262_v29 }
  0x1a   :  { %1102 = vmatpush3.bf16.msra.mxu1 %v1204_v8  ;;  %1114 = vmatpush3.bf16.msra.mxu0 %v1208_v12  ;;  %v990_v14 = vld [vmem:[%s1586_s3] ss:$0 sm:$0xff]  ;;  %v1210_v24 = vld [vmem:[%s1589_s6 + $0x10] sm:$0xff]   ;;  %v1211_v25 = vld [vmem:[%s1589_s6 + $0x18] sm:$0xff]  }
  0x1b   :  { %1103 = vmatprep.subr.bf16.mxu1 %v1260_v1  ;;  %1115 = vmatprep.subr.bf16.mxu0 %v1260_v1  ;;  %v1413_v26 = vld [vmem:[%s1584_s1] sm:$0xff]   ;;  %v350_v28 = vld [vmem:[%s1592_s9 + $0x10] sm:$0xff]  ;;  %v349_v30 = vld [vmem:[%s1592_s9 + $0x8] sm:$0xff] }
  0x1c   :  { %v348_v27 = vld [vmem:[%s1592_s9] sm:$0xff]  ;;  %376 = vperm.xlu1 %1196, %v350_v28   ;;  %v351_v31 = vld [vmem:[%s1592_s9 + $0x18] sm:$0xff]  ;;  %v353_v33 = vld [vmem:[%s1592_s9 + $0x28] sm:$0xff] }
  0x1d   :  { %366 = vperm.xlu0 %1195, %v348_v27   ;;  %v352_v32 = vld [vmem:[%s1592_s9 + $0x20] sm:$0xff]  ;;  %v354_v34 = vld [vmem:[%s1592_s9 + $0x30] sm:$0xff]  ;;  %v355_v35 = vld [vmem:[%s1592_s9 + $0x38] sm:$0xff] }
  0x1e   :  { %1104 = vmatpush3.bf16.msra.mxu1 %v1205_v9  ;;  %1116 = vmatpush3.bf16.msra.mxu0 %v1209_v13  ;;  %v356_v36 = vld [vmem:[%s1592_s9 + $0x40] sm:$0xff]  ;;  %v357_v37 = vld [vmem:[%s1592_s9 + $0x48] sm:$0xff]  ;;  %v358_v38 = vld [vmem:[%s1592_s9 + $0x50] sm:$0xff] }
  0x1f   :  { %1105 = vmatprep.subr.bf16.mxu1 %v1260_v1  ;;  %1117 = vmatprep.subr.bf16.mxu0 %v1260_v1  ;;  %v359_v39 = vld [vmem:[%s1592_s9 + $0x58] sm:$0xff]  ;;  %v360_v40 = vld [vmem:[%s1592_s9 + $0x60] sm:$0xff]  ;;  %v361_v41 = vld [vmem:[%s1592_s9 + $0x68] sm:$0xff] }
  0x20   :  { %381 = vperm.xlu1 %1196, %v351_v31   ;;  %v362_v42 = vld [vmem:[%s1592_s9 + $0x70] sm:$0xff]  ;;  %v363_v43 = vld [vmem:[%s1592_s9 + $0x78] sm:$0xff]  ;;  %v649_v44 = vld [vmem:[%s1594_s11] sm:$0xff] }
  0x21   :  { %371 = vperm.xlu0 %1195, %v349_v30   ;;  %v650_v45 = vld [vmem:[%s1594_s11 + $0x8] sm:$0xff]  ;;  %v651_v46 = vld [vmem:[%s1594_s11 + $0x10] sm:$0xff]  ;;  %v652_v47 = vld [vmem:[%s1594_s11 + $0x18] sm:$0xff] }
  0x22   :  { %1106 = vmatpush3.bf16.msra.mxu1 %v1206_v10  ;;  %1118 = vmatpush3.bf16.msra.mxu0 %v1210_v24  ;;  %v653_v48 = vld [vmem:[%s1594_s11 + $0x20] sm:$0xff]  ;;  %v654_v49 = vld [vmem:[%s1594_s11 + $0x28] sm:$0xff]  ;;  %v655_v50 = vld [vmem:[%s1594_s11 + $0x30] sm:$0xff] }
  0x23   :  { %1107 = vmatprep.subr.bf16.mxu1 %v1260_v1  ;;  %1119 = vmatprep.subr.bf16.mxu0 %v1260_v1  ;;  %v656_v51 = vld [vmem:[%s1594_s11 + $0x38] sm:$0xff]  ;;  %v802_v52 = vld [vmem:[%s1596_s13] sm:$0xff]  ;;  %v803_v53 = vld [vmem:[%s1596_s13 + $0x8] sm:$0xff] }
  0x24   :  { %391 = vperm.xlu1 %1196, %v353_v33   ;;  %v804_v54 = vld [vmem:[%s1596_s13 + $0x10] sm:$0xff]  ;;  %v805_v55 = vld [vmem:[%s1596_s13 + $0x18] sm:$0xff]  ;;  %v995_v56 = vld [vmem:[%s1588_s5] ss:$0 sm:$0xff] }
  0x25   :  { %386 = vperm.xlu0 %1195, %v352_v32   ;;  %v1214_v2 = vld [vmem:[%s1591_s8] sm:$0xff]   ;;  %v1213_v4 = vld [vmem:[%s1584_s1 + $0x8] sm:$0xff]   ;;  %v1216_v6 = vld [vmem:[%s1591_s8 + $0x10] sm:$0xff]  }
  0x26   :  { %1108 = vmatpush3.bf16.msra.mxu1 %v1207_v11  ;;  %1120 = vmatpush3.bf16.msra.mxu0 %v1211_v25  ;;  %v1215_v5 = vld [vmem:[%s1591_s8 + $0x8] sm:$0xff]   ;;  %v1217_v7 = vld [vmem:[%s1591_s8 + $0x18] sm:$0xff]   ;;  %v1218_v8 = vld [vmem:[%s1591_s8 + $0x20] sm:$0xff]  }
  0x27   :  { %1125 = vmatprep.subr.bf16.mxu0 %v1413_v26  ;;  %v1219_v9 = vld [vmem:[%s1591_s8 + $0x28] sm:$0xff]   ;;  %v1220_v10 = vld [vmem:[%s1591_s8 + $0x30] sm:$0xff]   ;;  %v1221_v11 = vld [vmem:[%s1591_s8 + $0x38] sm:$0xff]  }
  0x28   :  { %401 = vperm.xlu1 %1196, %v355_v35   ;;  %v1222_v12 = vld [vmem:[%s1593_s10] sm:$0xff]  }
  0x29   :  { %396 = vperm.xlu0 %1195, %v354_v34  }
  0x2c   :  { %411 = vperm.xlu1 %1196, %v357_v37  }
  0x2d   :  { %406 = vperm.xlu0 %1195, %v356_v36  }
  0x30   :  { %421 = vperm.xlu1 %1196, %v359_v39  }
  0x31   :  { %416 = vperm.xlu0 %1195, %v358_v38  }
  0x34   :  { %431 = vperm.xlu1 %1196, %v361_v41  }
  0x35   :  { %426 = vperm.xlu0 %1195, %v360_v40  }
  0x38   :  { %441 = vperm.xlu1 %1196, %v363_v43  }
  0x39   :  { %436 = vperm.xlu0 %1195, %v362_v42  }
  0x3c   :  { %664 = vperm.xlu1 %1196, %v650_v45  }
  0x3d   :  { %659 = vperm.xlu0 %1195, %v649_v44  }
  0x40   :  { %674 = vperm.xlu1 %1196, %v652_v47  }
  0x41   :  { %669 = vperm.xlu0 %1195, %v651_v46  }
  0x44   :  { %684 = vperm.xlu1 %1196, %v654_v49  }
  0x45   :  { %679 = vperm.xlu0 %1195, %v653_v48  }
  0x48   :  { %694 = vperm.xlu1 %1196, %v656_v51  }
  0x49   :  { %689 = vperm.xlu0 %1195, %v655_v50  }
  0x4c   :  { %813 = vperm.xlu1 %1196, %v803_v53  }
  0x4d   :  { %808 = vperm.xlu0 %1195, %v802_v52  }
  0x50   :  { %823 = vperm.xlu1 %1196, %v805_v55  }
  0x51   :  { %818 = vperm.xlu0 %1195, %v804_v54  }
  0x9c   :  { %v367_v13 = vpop.permute.xlu0 %366 }
  0xdc   :  { %v117_v15 = vpop.f32.mrb[0].mxu1 }
  0xdd   :  { %v118_v16 = vadd.f32 %v990_v14, %v117_v15  ;;  %v1091_v17 = vpop.f32.mrb[1].mxu1  ;;  %v372_v15 = vpop.permute.xlu0 %371 }
  0xde   :  { %v120_v18 = vpop.f32.mrb[2].mxu1  ;;  %v1004_v17 = vld [vmem:[%s1590_s7] ss:$0 sm:$0xff] }
  0xdf   :  { %v121_v19 = vadd.f32 %v990_v14, %v120_v18  ;;  %v1092_v20 = vpop.f32.mrb[3].mxu1  ;;  %v124_v21 = vmax.f32 %v118_v16, 0.0  ;;  %v377_v14 = vpop.permute.xlu1 %376 }
  0xe1   :  { %v125_v22 = vmax.f32 %v121_v19, 0.0 }
  0xe3   :  { %v126_v23 = vpack.c.bf16 %v125_v22, %v124_v21  ;;  %v382_v16 = vpop.permute.xlu1 %381  ;;  %v387_v21 = vpop.permute.xlu0 %386 }
  0xe5   :  { %1110 = vmatmul.mubr.bf16.vlgmr.msra.gmra.mrb[4].mxu1 %v126_v23 }
  0xe7   :  { %v392_v25 = vpop.permute.xlu1 %391  ;;  %v397_v29 = vpop.permute.xlu0 %396 }
  0xeb   :  { %v402_v33 = vpop.permute.xlu1 %401  ;;  %v407_v41 = vpop.permute.xlu0 %406 }
  0xef   :  { %v412_v45 = vpop.permute.xlu1 %411  ;;  %v417_v54 = vpop.permute.xlu0 %416 }
 0x1b8   :  { %v232_v57 = vpop.f32.mrb[4].mxu1 }
 0x1b9   :  { %v233_v58 = vadd.f32 %v995_v56, %v232_v57  ;;  %v1111_v59 = vpop.f32.mrb[5].mxu1 }
 0x1ba   :  { %v235_v60 = vpop.f32.mrb[6].mxu1 }
 0x1bb   :  { %v236_v61 = vadd.f32 %v995_v56, %v235_v60  ;;  %v1112_v62 = vpop.f32.mrb[7].mxu1  ;;  %v239_v63 = vmax.f32 %v233_v58, 0.0  ;;  %v422_v58 = vpop.permute.xlu1 %421 }
 0x1bd   :  { %v240_v0 = vmax.f32 %v236_v61, 0.0 }
 0x1bf   :  { %v241_v3 = vpack.c.bf16 %v240_v0, %v239_v63 }
 0x1c1   :  { %1122 = vmatmul.mubr.msk.bf16.vlgmr.msra.gmra.mrb[0].mxu0 %vm281_vm2, %v241_v3  ;;  %v427_v3 = vpop.permute.xlu0 %426 }
 0x1c2   :  { %1126 = vmatpush3.bf16.msra.mxu0 %v1413_v26  ;;  %1129 = vmatprep.mubr.msk.bf16.mxu0 %vm79_vm1, %v1214_v2 }
 0x1c3   :  { %1127 = vmatprep.subr.bf16.mxu0 %v1213_v4 }
 0x1c6   :  { %1128 = vmatpush3.bf16.msra.mxu0 %v1213_v4 }
 0x1c9   :  { %1130 = vmatmul.mubr.msk.bf16.vlgmr.msra.gmra.mrb[4].mxu0 %vm79_vm1, %v1215_v5 }
 0x1ca   :  { %1133 = vmatprep.mubr.msk.bf16.mxu0 %vm79_vm1, %v1216_v6 }
 0x1d1   :  { %1134 = vmatmul.mubr.msk.bf16.gmra.mrb[8].mxu0 %vm79_vm1, %v1217_v7 }
 0x1d2   :  { %1137 = vmatprep.mubr.msk.bf16.mxu0 %vm79_vm1, %v1218_v8  ;;  %v432_v8 = vpop.permute.xlu1 %431 }
 0x1d9   :  { %1138 = vmatmul.mubr.msk.bf16.gmra.mrb[12].mxu0 %vm79_vm1, %v1219_v9 }
 0x1da   :  { %1141 = vmatprep.mubr.msk.bf16.mxu0 %vm79_vm1, %v1220_v10 }
 0x1e1   :  { %1142 = vmatmul.mubr.msk.bf16.gmra.mrb[16].mxu0 %vm79_vm1, %v1221_v11 }
 0x1e2   :  { %1161 = vmatprep.mubr.bf16.mxu0 %v1222_v12 }
 0x294   :  { %v319_v18 = vpop.f32.mrb[0].mxu0 }
 0x295   :  { %v320_v19 = vadd.f32 %v1004_v17, %v319_v18  ;;  %v1123_v20 = vpop.f32.mrb[1].mxu0 }
 0x296   :  { %v322_v22 = vpop.f32.mrb[2].mxu0  ;;  %v442_v20 = vpop.permute.xlu1 %441 }
 0x297   :  { %v323_v23 = vadd.f32 %v1004_v17, %v322_v22  ;;  %v1124_v24 = vpop.f32.mrb[3].mxu0  ;;  %v326_v26 = vmax.f32 %v320_v19, 0.0 }
 0x299   :  { %v327_v27 = vmax.f32 %v323_v23, 0.0 }
 0x29b   :  { %v1546_v28 = vpack.c.bf16 %v327_v27, %v326_v26 }
 0x29c   :  { %v1131_v30 = vpop.f32.mrb[4].mxu0 }
 0x29d   :  { %v563_v31 = vadd.f32 %v1131_v30, %v377_v14  ;;  %v554_v32 = vpop.f32.mrb[5].mxu0 }
 0x29e   :  { %v555_v34 = vadd.f32 %v554_v32, %v367_v13  ;;  %v1132_v35 = vpop.f32.mrb[6].mxu0 }
 0x29f   :  { %v566_v36 = vadd.f32 %v1132_v35, %v382_v16  ;;  %v557_v37 = vpop.f32.mrb[7].mxu0  ;;  %v619_v39 = vmax.f32 %v563_v31, 0.0  ;;  %v1225_v35 = vld [vmem:[%s1593_s10 + $0x18] sm:$0xff]  }
 0x2a0   :  { %v558_v38 = vadd.f32 %v557_v37, %v372_v15  ;;  %v617_v42 = vmax.f32 %v555_v34, 0.0  ;;  %v437_v15 = vpop.permute.xlu0 %436  ;;  %v1224_v34 = vld [vmem:[%s1593_s10 + $0x10] sm:$0xff]  }
 0x2a1   :  { %v620_v40 = vmax.f32 %v566_v36, 0.0  ;;  %v1226_v36 = vld [vmem:[%s1595_s12] sm:$0xff]  }
 0x2a2   :  { %v618_v43 = vmax.f32 %v558_v38, 0.0  ;;  %1177 = vmatprep.mubr.msk.bf16.mxu1 %vm281_vm2, %v1226_v36  ;;  %v665_v38 = vpop.permute.xlu1 %664 }
 0x2a3   :  { %v642_v44 = vpack.c.bf16 %v620_v40, %v619_v39 }
 0x2a4   :  { %v641_v46 = vpack.c.bf16 %v618_v43, %v617_v42  ;;  %v1135_v47 = vpop.f32.mrb[8].mxu0  ;;  %v660_v37 = vpop.permute.xlu0 %659 }
 0x2a5   :  { %v579_v48 = vadd.f32 %v1135_v47, %v397_v29  ;;  %v570_v49 = vpop.f32.mrb[9].mxu0 }
 0x2a6   :  { %v571_v50 = vadd.f32 %v570_v49, %v387_v21  ;;  %v1136_v51 = vpop.f32.mrb[10].mxu0  ;;  %1145 = vmatprep.subr.bf16.mxu0 %v641_v46  ;;  %v675_v40 = vpop.permute.xlu1 %674 }
 0x2a7   :  { %v582_v52 = vadd.f32 %v1136_v51, %v402_v33  ;;  %v573_v53 = vpop.f32.mrb[11].mxu0  ;;  %1146 = vmatpush3.bf16.msra.mxu0 %v641_v46  ;;  %v623_v56 = vmax.f32 %v579_v48, 0.0  ;;  %v1223_v33 = vld [vmem:[%s1593_s10 + $0x8] sm:$0xff]  }
 0x2a8   :  { %v574_v55 = vadd.f32 %v573_v53, %v392_v25  ;;  %1147 = vmatprep.subr.bf16.mxu0 %v642_v44  ;;  %v621_v59 = vmax.f32 %v571_v50, 0.0  ;;  %v670_v39 = vpop.permute.xlu0 %669 }
 0x2a9   :  { %v624_v57 = vmax.f32 %v582_v52, 0.0 }
 0x2aa   :  { %v622_v60 = vmax.f32 %v574_v55, 0.0  ;;  %v685_v49 = vpop.permute.xlu1 %684 }
 0x2ab   :  { %v644_v61 = vpack.c.bf16 %v624_v57, %v623_v56  ;;  %1148 = vmatpush3.bf16.msra.mxu0 %v642_v44 }
 0x2ac   :  { %v643_v62 = vpack.c.bf16 %v622_v60, %v621_v59  ;;  %v1139_v63 = vpop.f32.mrb[12].mxu0  ;;  %v680_v44 = vpop.permute.xlu0 %679 }
 0x2ad   :  { %v595_v0 = vadd.f32 %v1139_v63, %v417_v54  ;;  %v586_v2 = vpop.f32.mrb[13].mxu0 }
 0x2ae   :  { %v587_v4 = vadd.f32 %v586_v2, %v407_v41  ;;  %v1140_v5 = vpop.f32.mrb[14].mxu0  ;;  %1149 = vmatprep.subr.bf16.mxu0 %v643_v62 }
 0x2af   :  { %v598_v6 = vadd.f32 %v1140_v5, %v422_v58  ;;  %v589_v7 = vpop.f32.mrb[15].mxu0  ;;  %1150 = vmatpush3.bf16.msra.mxu0 %v643_v62  ;;  %v627_v10 = vmax.f32 %v595_v0, 0.0 }
 0x2b0   :  { %v590_v9 = vadd.f32 %v589_v7, %v412_v45  ;;  %1151 = vmatprep.subr.bf16.mxu0 %v644_v61  ;;  %v625_v12 = vmax.f32 %v587_v4, 0.0  ;;  %v690_v56 = vpop.permute.xlu0 %689 }
 0x2b1   :  { %v628_v11 = vmax.f32 %v598_v6, 0.0 }
 0x2b2   :  { %v626_v13 = vmax.f32 %v590_v9, 0.0 }
 0x2b3   :  { %v646_v14 = vpack.c.bf16 %v628_v11, %v627_v10  ;;  %1152 = vmatpush3.bf16.msra.mxu0 %v644_v61  ;;  %v695_v61 = vpop.permute.xlu1 %694  ;;  %v1227_v10 = vld [vmem:[%s1595_s12 + $0x8] sm:$0xff]   ;;  %s1263_s12 = smov [#allocation2]  }
 0x2b4   :  { %v645_v16 = vpack.c.bf16 %v626_v13, %v625_v12  ;;  %v1143_v17 = vpop.f32.mrb[16].mxu0  ;;  %v809_v11 = vpop.permute.xlu0 %808  ;;  %s979_s0 = sshll.u32 %s1263_s12, 4  ;;  %s980_s0 = int_to_ptr.vmem [resolvable:$true] %s979_s0 }
 0x2b5   :  { %v611_v18 = vadd.f32 %v1143_v17, %v437_v15  ;;  %v602_v19 = vpop.f32.mrb[17].mxu0  ;;  %s1236_s5 = scalar_lea.vmem %s980_s0, 256  ;;  %p1241_p1 = scmp.lt.s32.totalorder %s980_s0, %s980_s0 }
 0x2b6   :  { %v603_v21 = vadd.f32 %v602_v19, %v427_v3  ;;  %v1144_v22 = vpop.f32.mrb[18].mxu0  ;;  %1153 = vmatprep.subr.bf16.mxu0 %v645_v16  ;;  %p1237_p0 = scmp.ne.s32.totalorder %s980_s0, %s1236_s5  ;;  %p1242_p2 = scmp.lt.s32.totalorder %s1236_s5, %s1236_s5 }
 0x2b7   :  { %v614_v23 = vadd.f32 %v1144_v22, %v442_v20  ;;  %v605_v24 = vpop.f32.mrb[19].mxu0  ;;  %1154 = vmatpush3.bf16.msra.mxu0 %v645_v16  ;;  %v631_v26 = vmax.f32 %v611_v18, 0.0  ;;  %v814_v12 = vpop.permute.xlu1 %813 }
 0x2b8   :  { %v606_v25 = vadd.f32 %v605_v24, %v432_v8  ;;  %1155 = vmatprep.subr.bf16.mxu0 %v646_v14  ;;  %v629_v29 = vmax.f32 %v603_v21, 0.0  ;;  %v819_v13 = vpop.permute.xlu0 %818  ;;  %p1243_p3 = por %p1242_p2, %p1241_p1 }
 0x2b9   :  { %v632_v27 = vmax.f32 %v614_v23, 0.0 }
 0x2ba   :  { %v630_v30 = vmax.f32 %v606_v25, 0.0  ;;  %p1244_p4 = pnand %p1243_p3, %p1237_p0 }
 0x2bb   :  { %v648_v31 = vpack.c.bf16 %v632_v27, %v631_v26  ;;  %1156 = vmatpush3.bf16.msra.mxu0 %v646_v14  ;;  %v824_v17 = vpop.permute.xlu1 %823 }
 0x2bc   :  { %v647_v32 = vpack.c.bf16 %v630_v30, %v629_v29 }
 0x2be   :  { %1157 = vmatprep.subr.bf16.mxu0 %v647_v32 }
 0x2bf   :  { %1158 = vmatpush3.bf16.msra.mxu0 %v647_v32 }
 0x2c0   :  { %1159 = vmatprep.subr.bf16.mxu0 %v648_v31 }
 0x2c3   :  { %1160 = vmatpush3.bf16.msra.mxu0 %v648_v31 }
 0x2c6   :  { %1162 = vmatmul.mubr.bf16.vlgmr.msra.gmra.mrb[20].mxu0 %v1223_v33 }
 0x2c7   :  { %1165 = vmatprep.mubr.bf16.mxu0 %v1224_v34 }
 0x2ce   :  { %1166 = vmatmul.mubr.bf16.gmra.mrb[24].mxu0 %v1225_v35 }
 0x399   :  { %v1163_v41 = vpop.f32.mrb[20].mxu0 }
 0x39a   :  { %v764_v42 = vadd.f32 %v1163_v41, %v670_v39  ;;  %v755_v43 = vpop.f32.mrb[21].mxu0 }
 0x39b   :  { %v756_v45 = vadd.f32 %v755_v43, %v660_v37  ;;  %v1164_v46 = vpop.f32.mrb[22].mxu0 }
 0x39c   :  { %v767_v47 = vadd.f32 %v1164_v46, %v675_v40  ;;  %v758_v48 = vpop.f32.mrb[23].mxu0  ;;  %v788_v51 = vmax.f32 %v764_v42, 0.0 }
 0x39d   :  { %v759_v50 = vadd.f32 %v758_v48, %v665_v38  ;;  %v786_v53 = vmax.f32 %v756_v45, 0.0 }
 0x39e   :  { %v789_v52 = vmax.f32 %v767_v47, 0.0 }
 0x39f   :  { %v787_v54 = vmax.f32 %v759_v50, 0.0 }
 0x3a0   :  { %v799_v55 = vpack.c.bf16 %v789_v52, %v788_v51 }
 0x3a1   :  { %v798_v57 = vpack.c.bf16 %v787_v54, %v786_v53  ;;  %v1167_v58 = vpop.f32.mrb[24].mxu0 }
 0x3a2   :  { %v780_v59 = vadd.f32 %v1167_v58, %v690_v56  ;;  %v771_v60 = vpop.f32.mrb[25].mxu0 }
 0x3a3   :  { %v772_v62 = vadd.f32 %v771_v60, %v680_v44  ;;  %v1168_v63 = vpop.f32.mrb[26].mxu0  ;;  %1169 = vmatprep.subr.bf16.mxu1 %v798_v57 }
 0x3a4   :  { %v783_v0 = vadd.f32 %v1168_v63, %v695_v61  ;;  %v774_v2 = vpop.f32.mrb[27].mxu0  ;;  %1170 = vmatpush3.bf16.msra.mxu1 %v798_v57  ;;  %v792_v4 = vmax.f32 %v780_v59, 0.0 }
 0x3a5   :  { %v775_v3 = vadd.f32 %v774_v2, %v685_v49  ;;  %1171 = vmatprep.subr.bf16.mxu1 %v799_v55  ;;  %v790_v6 = vmax.f32 %v772_v62, 0.0 }
 0x3a6   :  { %v793_v5 = vmax.f32 %v783_v0, 0.0 }
 0x3a7   :  { %v791_v7 = vmax.f32 %v775_v3, 0.0 }
 0x3a8   :  { %v801_v8 = vpack.c.bf16 %v793_v5, %v792_v4  ;;  %1172 = vmatpush3.bf16.msra.mxu1 %v799_v55 }
 0x3a9   :  { %v800_v9 = vpack.c.bf16 %v791_v7, %v790_v6 }
 0x3ab   :  { %1173 = vmatprep.subr.bf16.mxu1 %v800_v9 }
 0x3ac   :  { %1174 = vmatpush3.bf16.msra.mxu1 %v800_v9 }
 0x3ad   :  { %1175 = vmatprep.subr.bf16.mxu1 %v801_v8 }
 0x3b0   :  { %1176 = vmatpush3.bf16.msra.mxu1 %v801_v8 }
 0x3b1   :  { %1181 = vmatprep.subr.bf16.mxu1 %v1260_v1 }
 0x3b3   :  { %1178 = vmatmul.mubr.msk.bf16.vlgmr.msra.gmra.mrb[8].mxu1 %vm281_vm2, %v1227_v10 }
 0x3b4   :  { %1185 = vmatprep.mubr.msk.bf16.mxu1 %vm1261_vm0, %v1260_v1 }
 0x486   :  { %v1179_v14 = vpop.f32.mrb[8].mxu1 }
 0x487   :  { %v885_v15 = vadd.f32 %v1179_v14, %v819_v13  ;;  %v876_v16 = vpop.f32.mrb[9].mxu1 }
 0x488   :  { %v877_v18 = vadd.f32 %v876_v16, %v809_v11  ;;  %v1180_v19 = vpop.f32.mrb[10].mxu1 }
 0x489   :  { %v888_v20 = vadd.f32 %v1180_v19, %v824_v17  ;;  %v879_v21 = vpop.f32.mrb[11].mxu1  ;;  %v893_v23 = vmax.f32 %v885_v15, 0.0 }
 0x48a   :  { %v880_v22 = vadd.f32 %v879_v21, %v814_v12  ;;  %v891_v25 = vmax.f32 %v877_v18, 0.0 }
 0x48b   :  { %v894_v24 = vmax.f32 %v888_v20, 0.0 }
 0x48c   :  { %v892_v26 = vmax.f32 %v880_v22, 0.0 }
 0x48d   :  { %v897_v27 = vpack.c.bf16 %v894_v24, %v893_v23 }
 0x48e   :  { %v896_v29 = vpack.c.bf16 %v892_v26, %v891_v25 }
 0x490   :  { %1182 = vmatpush3.bf16.msra.mxu1 %v896_v29 }
 0x491   :  { %1183 = vmatprep.subr.bf16.mxu1 %v1260_v1 }
 0x494   :  { %1184 = vmatpush3.bf16.msra.mxu1 %v897_v27 }
 0x497   :  { %1186 = vmatmul.mubr.msk.bf16.vlgmr.msra.gmra.mrb[12].mxu1 %vm79_vm1, %v1546_v28 }
 0x56a   :  { %v935_v30 = vpop.f32.mrb[12].mxu1 }
 0x56b   :  { %v944_v31 = vand.u32 2147483647, %v935_v30  ;;  %v1187_v32 = vpop.f32.mrb[13].mxu1  ;;  %v942_v52 = vmax.f32 %v935_v30, 0.0 }
 0x56c   :  { %v938_v33 = vpop.f32.mrb[14].mxu1 }
 0x56d   :  { %v946_v34 = vsub.f32 0.0, %v944_v31  ;;  %v945_v35 = vand.u32 2147483647, %v938_v33  ;;  %v1188_v36 = vpop.f32.mrb[15].mxu1  ;;  %v943_v57 = vmax.f32 %v938_v33, 0.0 }
 0x56f   :  { %v948_v37 = vmul.f32 1.442695, %v946_v34  ;;  %v947_v38 = vsub.f32 0.0, %v945_v35 }
 0x571   :  { %1228 = vpow2.f32 %v948_v37  ;;  %v950_v39 = vmul.f32 1.442695, %v947_v38 }
 0x573   :  { %1230 = vpow2.f32 %v950_v39 }
 0x57b   :  { %v1229_v40 = vpop.eup %1228 }
 0x57c   :  { %v952_v41 = vadd.f32 1.0, %v1229_v40  ;;  %v955_v43 = vmul.f32 -0.5, %v1229_v40  ;;  %v958_v45 = vand.u32 2147483647, %v1229_v40 }
 0x57d   :  { %v1231_v42 = vpop.eup %1230 }
 0x57e   :  { %1232 = vlog2.f32 %v952_v41  ;;  %v961_v1 = vadd.f32 1.0, %v1231_v42  ;;  %v964_v28 = vmul.f32 -0.5, %v1231_v42  ;;  %v956_v44 = vadd.f32 1.0, %v955_v43 }
 0x57f   :  { %v967_v48 = vand.u32 2147483647, %v1231_v42  ;;  %vm959_vm3 = vcmp.lt.f32.partialorder %v958_v45, 0.0004427343 }
 0x580   :  { %1234 = vlog2.f32 %v961_v1  ;;  %v965_v46 = vadd.f32 1.0, %v964_v28  ;;  %v957_v50 = vmul.f32 %v1229_v40, %v956_v44 }
 0x581   :  { %vm968_vm4 = vcmp.lt.f32.partialorder %v967_v48, 0.0004427343 }
 0x582   :  { %v966_v55 = vmul.f32 %v1231_v42, %v965_v46 }
 0x588   :  { %v1233_v47 = vpop.eup %1232 }
 0x589   :  { %v954_v49 = vmul.f32 0.6931472, %v1233_v47 }
 0x58a   :  { %v1235_v51 = vpop.eup %1234 }
 0x58b   :  { %v960_v53 = vsel %vm959_vm3, %v957_v50, %v954_v49  ;;  %v963_v54 = vmul.f32 0.6931472, %v1235_v51 }
 0x58c   :  { %v970_v56 = vadd.f32 %v960_v53, %v942_v52 }
 0x58d   :  { %v969_v58 = vsel %vm968_vm4, %v966_v55, %v963_v54 }
 0x58e   :  { %972 = vst [vmem:[#allocation2] sm:$0xff] %v970_v56  ;;  %v971_v59 = vadd.f32 %v969_v58, %v943_v57 }
 0x590   :  { %973 = vst [vmem:[#allocation2 + $0x8] sm:$0xff] %v971_v59 }
 0x591   :  { %1247 = shalt.err (!%p1244_p4)
}
 0x592   :  { %s1248_s9 = scalar_lea.hbm %s1597_s14, 256 }
 0x593   :  { %p1249_p5 = scmp.ne.s32.totalorder %s1597_s14, %s1248_s9  ;;  %p1252_p6 = scmp.lt.u32.totalorder %s1248_s9, %s1597_s14 }
 0x595   :  { %p1254_p7 = pnand %p1252_p6, %p1249_p5 }
 0x597   :  { %1257 = shalt.err (!%p1254_p7)
}
 0x598   :  { %s1264_s26 = smov 128   ;;  %s1265_s27 = smov 8  }
 0x599   :  { %985 = dma.vmem_to_hbm [thread:$0]  %s980_s0, 256, %s1597_s14, [#allocation3], %s1264_s26, %s1264_s26, %s1265_s27  }
 0x59a   :  { %1258 = dma.done.wait [#allocation3], 256  }
 0x59b   :  { %1259 = vsyncadd [#allocation3], 4294967040 }
 0x59c   :  { %989 = vsyncpa [#allocation3], 1 }

</bundles_post_ra>
